<compile_context>
chip_gen: v7x
topology: tpu7x:2x2x1
jax: 0.10.0
libtpu: 0.0.40
codegen_flags: <defaults>
</compile_context>

<pallas_src>
import functools
import math

import jax
import jax.numpy as jnp
from jax.experimental import pallas as pl
from jax.experimental.pallas import tpu as pltpu

CAPS_PER_ROW = 128   # capsules packed per output row -> 128-wide lane-dense stores
MAX_TILE_ROWS = 64   # packed rows per grid step (~4 MiB VMEM per input buffer)


def _capslen_kernel(x_ref, o_ref, *, eps):
    # x_ref: (TILE_R, CAPS_PER_ROW, D) block in VMEM;  o_ref: (TILE_R, CAPS_PER_ROW)
    x = x_ref[...].astype(jnp.float32)          # compute in f32 (v5e-safe, matches torch)
    sq_sum = jnp.sum(x * x, axis=-1)            # per-capsule sum of squares
    o_ref[...] = jnp.sqrt(sq_sum + eps).astype(o_ref.dtype)


def caps_len(x: jax.Array, eps: float = 1e-7) -> jax.Array:
    """Pallas TPU implementation of CapsLen.forward: sqrt(sum(x**2, -1) + eps)."""
    *batch_dims, d = x.shape
    batch_dims = tuple(batch_dims)
    m = math.prod(batch_dims)

    caps = CAPS_PER_ROW
    r = pl.cdiv(m, caps)                      # packed rows of `caps` capsules
    tile_r = min(MAX_TILE_ROWS, r)            # full extent if small, else 64 (mult. of 8)
    r_pad = pl.cdiv(r, tile_r) * tile_r       # whole number of tiles -> no partial blocks
    m_pad = r_pad * caps

    xf = x.reshape(m, d)
    if m_pad != m:                            # zero-pad remainder capsules (sliced off below)
        xf = jnp.pad(xf, ((0, m_pad - m), (0, 0)))
    x_packed = xf.reshape(r_pad, caps, d)     # free reshape: data stays contiguous in HBM

    itemsize = jnp.dtype(x.dtype).itemsize
    cost = pl.CostEstimate(
        flops=2 * m_pad * d,                  # square + accumulate
        transcendentals=m_pad,                # sqrt
        bytes_accessed=m_pad * d * itemsize + m_pad * itemsize,
    )

    out = pl.pallas_call(
        functools.partial(_capslen_kernel, eps=eps),
        out_shape=jax.ShapeDtypeStruct((r_pad, caps), x.dtype),
        grid=(r_pad // tile_r,),
        in_specs=[pl.BlockSpec((tile_r, caps, d), lambda i: (i, 0, 0))],
        out_specs=pl.BlockSpec((tile_r, caps), lambda i: (i, 0)),
        compiler_params=pltpu.CompilerParams(
            # Independent row-tiles: lets v7x shard the grid over its 2 TensorCores.
            dimension_semantics=("parallel",),
        ),
        cost_estimate=cost,
    )(x_packed)

    return out.reshape(m_pad)[:m].reshape(batch_dims)


if __name__ == "__main__":
    key = jax.random.PRNGKey(0)

    # Small shape consistent with the module: batch=2, 16 capsules of dim 8.
    x = jax.random.normal(key, (2, 16, 8), dtype=jnp.float32)
    out = jax.block_until_ready(caps_len(x))
    ref = jnp.sqrt(jnp.sum(x * x, axis=-1) + 1e-7)
    assert out.shape == (2, 16)
    assert jnp.allclose(out, ref, atol=1e-5, rtol=1e-5)

    # Second case exercising the zero-padded remainder + multi-step grid path.
    x2 = jax.random.normal(jax.random.PRNGKey(1), (4, 2500, 8), dtype=jnp.float32)
    out2 = jax.block_until_ready(caps_len(x2))
    ref2 = jnp.sqrt(jnp.sum(x2 * x2, axis=-1) + 1e-7)
    assert out2.shape == (4, 2500)
    assert jnp.allclose(out2, ref2, atol=1e-5, rtol=1e-5)

    print("KERNEL_OK")
</pallas_src>

<mosaic_0001>
module attributes {stable_mosaic.version = 11 : i64} {
  func.func @_capslen_kernel(%arg0: i32, %arg1: memref<1x128x8xf32, #tpu.memory_space<vmem>>, %arg2: memref<1x128xf32, #tpu.memory_space<vmem>>) attributes {dimension_semantics = [#tpu.dimension_semantics<parallel>], iteration_bounds = array<i64: 1>, scalar_prefetch = 0 : i64, scratch_operands = 0 : i64, tpu.core_type = #tpu.core_type<tc>, window_params = [{transform_indices = @transform_0, window_bounds = array<i64: 1, 128, 8>}, {transform_indices = @transform_1, window_bounds = array<i64: 1, 128>}]} {
    %c0 = arith.constant 0 : index
    %c0_0 = arith.constant 0 : index
    %c0_1 = arith.constant 0 : index
    %0 = vector.load %arg1[%c0, %c0_0, %c0_1] : memref<1x128x8xf32, #tpu.memory_space<vmem>>, vector<1x128x8xf32>
    %1 = arith.mulf %0, %0 : vector<1x128x8xf32>
    %cst = arith.constant dense<0.000000e+00> : vector<1x128xf32>
    %2 = vector.multi_reduction <add>, %1, %cst [2] : vector<1x128x8xf32> to vector<1x128xf32>
    %cst_2 = arith.constant 1.000000e-07 : f32
    %3 = vector.broadcast %cst_2 : f32 to vector<1x128xf32>
    %4 = arith.addf %2, %3 : vector<1x128xf32>
    %5 = math.sqrt %4 : vector<1x128xf32>
    %c0_3 = arith.constant 0 : index
    %c0_4 = arith.constant 0 : index
    %6 = vector.load %arg2[%c0_3, %c0_4] : memref<1x128xf32, #tpu.memory_space<vmem>>, vector<1x128xf32>
    tpu.vector_store %arg2[%c0_3, %c0_4], %5 {strides = array<i32>} : memref<1x128xf32, #tpu.memory_space<vmem>>, vector<1x128xf32>,
    return
  }
  func.func @transform_0(%arg0: i32) -> (i32, i32, i32) {
    %c0_i32 = arith.constant 0 : i32
    %c0_i32_0 = arith.constant 0 : i32
    %c0_i32_1 = arith.constant 0 : i32
    return %arg0, %c0_i32, %c0_i32_0 : i32, i32, i32
  }
  func.func @transform_1(%arg0: i32) -> (i32, i32) {
    %c0_i32 = arith.constant 0 : i32
    %c0_i32_0 = arith.constant 0 : i32
    return %arg0, %c0_i32 : i32, i32
  }
}

</mosaic_0001>

<bundles_post_ra>
// kernel: tpu_custom_call.1
= control target key start
LH: loop header
LB: loop body
LE: loop exit
PB: predicated region body
PF: predicated region fallthrough
CT: control target
= control target key end

     0   :  { %vm41_vm0 = vcmask 64512   ;;  %s792_s0 = inlined_call_operand.vmem [shape: f32[1,128,8], index: 0, kind: input, shape index: {}]   ;;  %s793_s1 = inlined_call_operand.hbm [shape: f32[1,128], index: 1, kind: output, shape index: {}]  }
   0x1   :  { %v11_v0 = vld [vmem:[%s792_s0 + $0x10] sm:$0xff]  ;;  %v9_v1 = vld [vmem:[%s792_s0] sm:$0xff]  ;;  %v12_v2 = vld [vmem:[%s792_s0 + $0x18] sm:$0xff] }
   0x2   :  { %v27_v3 = vmul.f32 %v11_v0, %v11_v0  ;;  %v25_v4 = vmul.f32 %v9_v1, %v9_v1  ;;  %v28_v5 = vmul.f32 %v12_v2, %v12_v2  ;;  %v10_v6 = vld [vmem:[%s792_s0 + $0x8] sm:$0xff]  ;;  %v13_v9 = vld [vmem:[%s792_s0 + $0x20] sm:$0xff] }
   0x3   :  { %v26_v7 = vmul.f32 %v10_v6, %v10_v6  ;;  %v14_v8 = vld [vmem:[%s792_s0 + $0x28] sm:$0xff]  ;;  %v29_v15 = vmul.f32 %v13_v9, %v13_v9 }
   0x4   :  { %v48_v10 = vsel %vm41_vm0, %v27_v3, 0.0  ;;  %v42_v11 = vsel %vm41_vm0, %v25_v4, 0.0  ;;  %v51_v12 = vsel %vm41_vm0, %v28_v5, 0.0  ;;  %v30_v14 = vmul.f32 %v14_v8, %v14_v8 }
   0x5   :  { %49 = vadd.xlane.f32.xlu1 %v48_v10  ;;  %43 = vadd.xlane.f32.xlu0 %v42_v11  ;;  %v45_v13 = vsel %vm41_vm0, %v26_v7, 0.0 }
   0x6   :  { %6 = vsyncpa [#allocation3], 0  ;;  %v16_v16 = vld [vmem:[%s792_s0 + $0x38] sm:$0xff]  ;;  %v15_v17 = vld [vmem:[%s792_s0 + $0x30] sm:$0xff]  ;;  %v57_v18 = vsel %vm41_vm0, %v30_v14, 0.0  ;;  %v54_v19 = vsel %vm41_vm0, %v29_v15, 0.0  ;;  %v234_v48 = vlaneseq }
   0x7   :  { %v32_v20 = vmul.f32 %v16_v16, %v16_v16  ;;  %v31_v21 = vmul.f32 %v15_v17, %v15_v17  ;;  %v18_v22 = vld [vmem:[%s792_s0 + $0x48] sm:$0xff]  ;;  %v17_v23 = vld [vmem:[%s792_s0 + $0x40] sm:$0xff]  ;;  %v20_v28 = vld [vmem:[%s792_s0 + $0x58] sm:$0xff]  ;;  %vm245_vm1 = vcmask 130112   ;;  %vm252_vm2 = vcmask 195712  }
   0x8   :  { %v34_v26 = vmul.f32 %v18_v22, %v18_v22  ;;  %v33_v27 = vmul.f32 %v17_v23, %v17_v23  ;;  %v19_v29 = vld [vmem:[%s792_s0 + $0x50] sm:$0xff]  ;;  %v36_v32 = vmul.f32 %v20_v28, %v20_v28  ;;  %v22_v34 = vld [vmem:[%s792_s0 + $0x68] sm:$0xff]  ;;  %v21_v35 = vld [vmem:[%s792_s0 + $0x60] sm:$0xff]  ;;  %v493_v49 = vand.u32 127, %v234_v48 }
   0x9   :  { %52 = vadd.xlane.f32.xlu1 %v51_v12  ;;  %46 = vadd.xlane.f32.xlu0 %v45_v13  ;;  %v63_v24 = vsel %vm41_vm0, %v32_v20, 0.0  ;;  %v60_v25 = vsel %vm41_vm0, %v31_v21, 0.0  ;;  %v35_v33 = vmul.f32 %v19_v29, %v19_v29  ;;  %v38_v38 = vmul.f32 %v22_v34, %v22_v34  ;;  %v24_v40 = vld [vmem:[%s792_s0 + $0x78] sm:$0xff]  ;;  %v23_v41 = vld [vmem:[%s792_s0 + $0x70] sm:$0xff]  ;;  %s418_s0 = smov [#allocation2]  }
   0xa   :  { %v69_v30 = vsel %vm41_vm0, %v34_v26, 0.0  ;;  %v66_v31 = vsel %vm41_vm0, %v33_v27, 0.0  ;;  %v75_v36 = vsel %vm41_vm0, %v36_v32, 0.0  ;;  %v37_v39 = vmul.f32 %v21_v35, %v21_v35  ;;  %s353_s9 = sshll.u32 %s418_s0, 4  ;;  %s354_s9 = int_to_ptr.vmem [resolvable:$true] %s353_s9 }
   0xb   :  { %v72_v37 = vsel %vm41_vm0, %v35_v33, 0.0  ;;  %v81_v42 = vsel %vm41_vm0, %v38_v38, 0.0  ;;  %v40_v44 = vmul.f32 %v24_v40, %v24_v40  ;;  %v39_v45 = vmul.f32 %v23_v41, %v23_v41  ;;  %s394_s10 = scalar_lea.vmem %s354_s9, 16  ;;  %s398_s11 = scalar_lea.vmem %s354_s9, 32 }
   0xc   :  { %v78_v43 = vsel %vm41_vm0, %v37_v39, 0.0  ;;  %v499_v54 = vshrl.u32 %v234_v48, 7  ;;  %v502_v55 = vadd.s32 4294967280, %v493_v49  ;;  %v515_v62 = vadd.s32 4294967272, %v493_v49  ;;  %p395_p0 = scmp.ne.s32.totalorder %s354_s9, %s394_s10  ;;  %p399_p1 = scmp.lt.s32.totalorder %s354_s9, %s354_s9 }
   0xd   :  { %58 = vadd.xlane.f32.xlu1 %v57_v18  ;;  %55 = vadd.xlane.f32.xlu0 %v54_v19  ;;  %v87_v46 = vsel %vm41_vm0, %v40_v44, 0.0  ;;  %v84_v47 = vsel %vm41_vm0, %v39_v45, 0.0  ;;  %v519_v63 = vadd.s32 4294967288, %v493_v49  ;;  %v522_v0 = vadd.s32 4294967256, %v493_v49  ;;  %p400_p2 = scmp.lt.s32.totalorder %s398_s11, %s394_s10 }
   0xe   :  { %v250_v60 = vsub.s32 %v502_v55, %v499_v54  ;;  %v238_v61 = vsub.s32 %v493_v49, %v499_v54  ;;  %v525_v1 = vadd.s32 4294967264, %v493_v49  ;;  %v529_v4 = vadd.s32 4294967240, %v493_v49 }
   0xf   :  { %v532_v5 = vadd.s32 4294967248, %v493_v49  ;;  %v535_v6 = vadd.s32 4294967232, %v493_v49  ;;  %v542_v9 = vadd.s32 4294967224, %v493_v49  ;;  %v545_v10 = vadd.s32 4294967216, %v493_v49  ;;  %p401_p3 = por %p400_p2, %p399_p1 }
  0x10   :  { %v257_v11 = vsub.s32 %v515_v62, %v499_v54  ;;  %v550_v12 = vadd.s32 4294967208, %v493_v49  ;;  %v553_v13 = vadd.s32 4294967200, %v493_v49  ;;  %v556_v14 = vadd.s32 4294967192, %v493_v49 }
  0x11   :  { %64 = vadd.xlane.f32.xlu1 %v63_v24  ;;  %61 = vadd.xlane.f32.xlu0 %v60_v25  ;;  %v243_v15 = vsub.s32 %v519_v63, %v499_v54  ;;  %v271_v16 = vsub.s32 %v522_v0, %v499_v54  ;;  %v264_v17 = vsub.s32 %v525_v1, %v499_v54  ;;  %v590_v34 = vadd.s32 4294967184, %v493_v49  ;;  %p402_p4 = pnand %p401_p3, %p395_p0 }
  0x12   :  { %v285_v18 = vsub.s32 %v529_v4, %v499_v54  ;;  %v278_v20 = vsub.s32 %v532_v5, %v499_v54  ;;  %v292_v22 = vsub.s32 %v535_v6, %v499_v54  ;;  %v299_v26 = vsub.s32 %v542_v9, %v499_v54 }
  0x13   :  { %v306_v27 = vsub.s32 %v545_v10, %v499_v54  ;;  %v327_v32 = vsub.s32 %v556_v14, %v499_v54  ;;  %v593_v35 = vadd.s32 4294967176, %v493_v49  ;;  %vm259_vm9 = vcmask 261312  }
  0x14   :  { %vm266_vm14 = vcmask 326912  }
  0x15   :  { %70 = vadd.xlane.f32.xlu1 %v69_v30  ;;  %67 = vadd.xlane.f32.xlu0 %v66_v31  ;;  %v313_v30 = vsub.s32 %v550_v12, %v499_v54  ;;  %v320_v31 = vsub.s32 %v553_v13, %v499_v54  ;;  %v341_v5 = vsub.s32 %v593_v35, %v499_v54 }
  0x19   :  { %76 = vadd.xlane.f32.xlu1 %v75_v36  ;;  %73 = vadd.xlane.f32.xlu0 %v72_v37 }
  0x1d   :  { %82 = vadd.xlane.f32.xlu1 %v81_v42  ;;  %79 = vadd.xlane.f32.xlu0 %v78_v43 }
  0x21   :  { %88 = vadd.xlane.f32.xlu1 %v87_v46  ;;  %85 = vadd.xlane.f32.xlu0 %v84_v47 }
  0x92   :  { %v50_v50 = vpop.xlane.xlu1 %49  ;;  %v44_v51 = vpop.xlane.xlu0 %43 }
  0x93   :  { %v495_v52 = vadd.f32 1e-07, %v50_v50  ;;  %v497_v53 = vadd.f32 1e-07, %v44_v51 }
  0x95   :  { %362 = vrsqrt.f32 %v495_v52  ;;  %vm122_vm3 = vcmp.eq.f32.partialorder %v495_v52, inf  ;;  %vm124_vm4 = vcmp.eq.f32.partialorder %v495_v52, 0.0  ;;  %vm108_vm5 = vcmp.eq.f32.partialorder %v497_v53, inf }
  0x96   :  { %364 = vrsqrt.f32 %v497_v53  ;;  %v53_v56 = vpop.xlane.xlu1 %52  ;;  %v47_v57 = vpop.xlane.xlu0 %46  ;;  %v125_v39 = vand.u32 2147483648, %v495_v52  ;;  %vm110_vm6 = vcmp.eq.f32.partialorder %v497_v53, 0.0  ;;  %v111_v41 = vand.u32 2147483648, %v497_v53 }
  0x97   :  { %v506_v58 = vadd.f32 1e-07, %v53_v56  ;;  %v508_v59 = vadd.f32 1e-07, %v47_v57 }
  0x99   :  { %366 = vrsqrt.f32 %v506_v58  ;;  %vm129_vm7 = vcmp.eq.f32.partialorder %v506_v58, inf  ;;  %vm131_vm8 = vcmp.eq.f32.partialorder %v506_v58, 0.0  ;;  %v132_v46 = vand.u32 2147483648, %v506_v58 }
  0x9a   :  { %368 = vrsqrt.f32 %v508_v59  ;;  %v59_v2 = vpop.xlane.xlu1 %58  ;;  %v56_v3 = vpop.xlane.xlu0 %55  ;;  %vm115_vm10 = vcmp.eq.f32.partialorder %v508_v59, inf  ;;  %v118_v51 = vand.u32 2147483648, %v508_v59  ;;  %vm117_vm11 = vcmp.eq.f32.partialorder %v508_v59, 0.0 }
  0x9b   :  { %v537_v7 = vadd.f32 1e-07, %v59_v2  ;;  %v539_v8 = vadd.f32 1e-07, %v56_v3 }
  0x9d   :  { %370 = vrsqrt.f32 %v537_v7  ;;  %vm143_vm12 = vcmp.eq.f32.partialorder %v537_v7, inf  ;;  %vm145_vm13 = vcmp.eq.f32.partialorder %v537_v7, 0.0  ;;  %vm136_vm15 = vcmp.eq.f32.partialorder %v539_v8, inf }
  0x9e   :  { %372 = vrsqrt.f32 %v539_v8  ;;  %v65_v19 = vpop.xlane.xlu1 %64  ;;  %v62_v21 = vpop.xlane.xlu0 %61  ;;  %vm138_vm0 = vcmp.eq.f32.partialorder %v539_v8, 0.0 }
  0x9f   :  { %v363_v23 = vpop.eup %362  ;;  %v572_v24 = vadd.f32 1e-07, %v65_v19  ;;  %v574_v25 = vadd.f32 1e-07, %v62_v21 }
  0xa0   :  { %v365_v28 = vpop.eup %364  ;;  %v121_v29 = vmul.f32 %v363_v23, %v495_v52 }
  0xa1   :  { %v107_v33 = vmul.f32 %v365_v28, %v497_v53  ;;  %374 = vrsqrt.f32 %v572_v24  ;;  %v160_v1 = vand.u32 2147483648, %v572_v24 }
  0xa2   :  { %376 = vrsqrt.f32 %v574_v25  ;;  %v71_v36 = vpop.xlane.xlu1 %70  ;;  %v68_v37 = vpop.xlane.xlu0 %67  ;;  %v123_v43 = vsel %vm122_vm3, %v495_v52, %v121_v29  ;;  %vm150_vm3 = vcmp.eq.f32.partialorder %v574_v25, inf }
  0xa3   :  { %v367_v38 = vpop.eup %366  ;;  %v109_v40 = vsel %vm108_vm5, %v497_v53, %v107_v33  ;;  %v606_v45 = vadd.f32 1e-07, %v71_v36  ;;  %v611_v48 = vadd.f32 1e-07, %v68_v37  ;;  %v126_v2 = vsel %vm124_vm4, %v125_v39, %v123_v43 }
  0xa4   :  { %v369_v42 = vpop.eup %368  ;;  %v128_v44 = vmul.f32 %v367_v38, %v506_v58  ;;  %v112_v50 = vsel %vm110_vm6, %v111_v41, %v109_v40  ;;  %v251_v33 = vrot.slane %v126_v2, %v250_v60  ;;  %v139_v36 = vand.u32 2147483648, %v539_v8 }
  0xa5   :  { %v114_v47 = vmul.f32 %v369_v42, %v508_v59  ;;  %378 = vrsqrt.f32 %v606_v45  ;;  %v239_v52 = vrot.slane %v112_v50, %v238_v61  ;;  %vm280_vm4 = vcmask 458112  }
  0xa6   :  { %v77_v53 = vpop.xlane.xlu1 %76  ;;  %v74_v56 = vpop.xlane.xlu0 %73  ;;  %380 = vrsqrt.f32 %v611_v48  ;;  %v130_v21 = vsel %vm129_vm7, %v506_v58, %v128_v44  ;;  %vm159_vm5 = vcmp.eq.f32.partialorder %v572_v24, 0.0  ;;  %v153_v50 = vand.u32 2147483648, %v574_v25 }
  0xa7   :  { %v371_v57 = vpop.eup %370  ;;  %v116_v3 = vsel %vm115_vm10, %v508_v59, %v114_v47  ;;  %v639_v37 = vadd.f32 1e-07, %v77_v53  ;;  %v133_v63 = vsel %vm131_vm8, %v132_v46, %v130_v21  ;;  %v645_v40 = vadd.f32 1e-07, %v74_v56 }
  0xa8   :  { %v373_v19 = vpop.eup %372  ;;  %v119_v23 = vsel %vm117_vm11, %v118_v51, %v116_v3  ;;  %v142_v28 = vmul.f32 %v371_v57, %v537_v7  ;;  %v258_v46 = vrot.slane %v133_v63, %v257_v11  ;;  %v146_v47 = vand.u32 2147483648, %v537_v7 }
  0xa9   :  { %v244_v59 = vrot.slane %v119_v23, %v243_v15  ;;  %v135_v29 = vmul.f32 %v373_v19, %v539_v8  ;;  %382 = vrsqrt.f32 %v639_v37  ;;  %vm152_vm6 = vcmp.eq.f32.partialorder %v574_v25, 0.0 }
  0xaa   :  { %v83_v49 = vpop.xlane.xlu1 %82  ;;  %v80_v61 = vpop.xlane.xlu0 %79  ;;  %v144_v41 = vsel %vm143_vm12, %v537_v7, %v142_v28  ;;  %384 = vrsqrt.f32 %v645_v40  ;;  %vm287_vm7 = vcmask 523712   ;;  %vm294_vm8 = vcmask 589312  }
  0xab   :  { %v375_v38 = vpop.eup %374  ;;  %v246_v15 = vsel %vm245_vm1, %v244_v59, %v239_v52  ;;  %v137_v39 = vsel %vm136_vm15, %v539_v8, %v135_v29  ;;  %v652_v42 = vadd.f32 1e-07, %v83_v49  ;;  %vm273_vm1 = vcmask 392512  }
  0xac   :  { %v377_v55 = vpop.eup %376  ;;  %v253_v60 = vsel %vm252_vm2, %v251_v33, %v246_v15  ;;  %v140_v43 = vsel %vm138_vm0, %v139_v36, %v137_v39  ;;  %v156_v58 = vmul.f32 %v375_v38, %v572_v24  ;;  %vm157_vm2 = vcmp.eq.f32.partialorder %v572_v24, inf }
  0xad   :  { %v149_v44 = vmul.f32 %v377_v55, %v574_v25  ;;  %v147_v62 = vsel %vm145_vm13, %v146_v47, %v144_v41  ;;  %v260_v11 = vsel %vm259_vm9, %v258_v46, %v253_v60  ;;  %v265_v57 = vrot.slane %v140_v43, %v264_v17 }
  0xae   :  { %v89_v51 = vpop.xlane.xlu1 %88  ;;  %v86_v53 = vpop.xlane.xlu0 %85  ;;  %v158_v3 = vsel %vm157_vm2, %v572_v24, %v156_v58  ;;  %386 = vrsqrt.f32 %v652_v42  ;;  %v678_v23 = vadd.f32 1e-07, %v80_v61  ;;  %vm171_vm9 = vcmp.eq.f32.partialorder %v606_v45, inf }
  0xaf   :  { %v151_v8 = vsel %vm150_vm3, %v574_v25, %v149_v44  ;;  %v379_v56 = vpop.eup %378  ;;  %v680_v28 = vadd.f32 1e-07, %v89_v51  ;;  %v682_v52 = vadd.f32 1e-07, %v86_v53  ;;  %vm164_vm10 = vcmp.eq.f32.partialorder %v611_v48, inf }
  0xb0   :  { %v381_v2 = vpop.eup %380  ;;  %v154_v19 = vsel %vm152_vm6, %v153_v50, %v151_v8  ;;  %v170_v21 = vmul.f32 %v379_v56, %v606_v45  ;;  %vm166_vm11 = vcmp.eq.f32.partialorder %v611_v48, 0.0  ;;  %v272_v17 = vrot.slane %v147_v62, %v271_v16 }
  0xb1   :  { %v163_v7 = vmul.f32 %v381_v2, %v611_v48  ;;  %v167_v59 = vand.u32 2147483648, %v611_v48  ;;  %388 = vrsqrt.f32 %v678_v23  ;;  %v267_v29 = vsel %vm266_vm14, %v265_v57, %v260_v11 }
  0xb2   :  { %v161_v33 = vsel %vm159_vm5, %v160_v1, %v158_v3  ;;  %v279_v36 = vrot.slane %v154_v19, %v278_v20  ;;  %390 = vrsqrt.f32 %v680_v28  ;;  %vm301_vm12 = vcmask 654912  }
  0xb3   :  { %v165_v25 = vsel %vm164_vm10, %v611_v48, %v163_v7  ;;  %v172_v0 = vsel %vm171_vm9, %v606_v45, %v170_v21  ;;  %392 = vrsqrt.f32 %v682_v52  ;;  %vm308_vm13 = vcmask 720512   ;;  %v383_v49 = vpop.eup %382 }
  0xb4   :  { %v168_v16 = vsel %vm166_vm11, %v167_v59, %v165_v25  ;;  %v334_v48 = vsub.s32 %v590_v34, %v499_v54  ;;  %vm173_vm14 = vcmp.eq.f32.partialorder %v606_v45, 0.0  ;;  %v174_v24 = vand.u32 2147483648, %v606_v45  ;;  %v385_v63 = vpop.eup %384 }
  0xb5   :  { %vm185_vm15 = vcmp.eq.f32.partialorder %v639_v37, inf  ;;  %v286_v20 = vrot.slane %v161_v33, %v285_v18  ;;  %v184_v61 = vmul.f32 %v383_v49, %v639_v37  ;;  %vm187_vm0 = vcmp.eq.f32.partialorder %v639_v37, 0.0 }
  0xb6   :  { %v274_v38 = vsel %vm273_vm1, %v272_v17, %v267_v29  ;;  %v175_v15 = vsel %vm173_vm14, %v174_v24, %v172_v0  ;;  %v293_v45 = vrot.slane %v168_v16, %v292_v22  ;;  %v188_v39 = vand.u32 2147483648, %v639_v37 }
  0xb7   :  { %v281_v35 = vsel %vm280_vm4, %v279_v36, %v274_v38  ;;  %vm315_vm2 = vcmask 786112   ;;  %v186_v4 = vsel %vm185_vm15, %v639_v37, %v184_v61  ;;  %v177_v18 = vmul.f32 %v385_v63, %v645_v40 }
  0xb8   :  { %vm178_vm3 = vcmp.eq.f32.partialorder %v645_v40, inf  ;;  %vm180_vm5 = vcmp.eq.f32.partialorder %v645_v40, 0.0  ;;  %vm322_vm1 = vcmask 851712   ;;  %v387_v55 = vpop.eup %386  ;;  %v181_v60 = vand.u32 2147483648, %v645_v40 }
  0xb9   :  { %vm199_vm6 = vcmp.eq.f32.partialorder %v652_v42, inf  ;;  %vm201_vm9 = vcmp.eq.f32.partialorder %v652_v42, 0.0  ;;  %v202_v6 = vand.u32 2147483648, %v652_v42  ;;  %vm329_vm4 = vcmask 917312  }
  0xba   :  { %v179_v22 = vsel %vm178_vm3, %v645_v40, %v177_v18  ;;  %v198_v41 = vmul.f32 %v387_v55, %v652_v42  ;;  %v288_v43 = vsel %vm287_vm7, %v286_v20, %v281_v35  ;;  %v300_v58 = vrot.slane %v175_v15, %v299_v26 }
  0xbb   :  { %vm192_vm10 = vcmp.eq.f32.partialorder %v678_v23, inf  ;;  %v182_v44 = vsel %vm180_vm5, %v181_v60, %v179_v22  ;;  %v189_v46 = vsel %vm187_vm0, %v188_v39, %v186_v4  ;;  %v295_v47 = vsel %vm294_vm8, %v293_v45, %v288_v43  ;;  %v389_v8 = vpop.eup %388 }
  0xbc   :  { %v195_v50 = vand.u32 2147483648, %v678_v23  ;;  %vm194_vm11 = vcmp.eq.f32.partialorder %v678_v23, 0.0  ;;  %v200_v40 = vsel %vm199_vm6, %v652_v42, %v198_v41  ;;  %v307_v9 = vrot.slane %v182_v44, %v306_v27  ;;  %v391_v26 = vpop.eup %390 }
  0xbd   :  { %v191_v51 = vmul.f32 %v389_v8, %v678_v23  ;;  %v203_v37 = vsel %vm201_vm9, %v202_v6, %v200_v40  ;;  %vm206_vm7 = vcmp.eq.f32.partialorder %v682_v52, inf  ;;  %v209_v53 = vand.u32 2147483648, %v682_v52  ;;  %v393_v56 = vpop.eup %392 }
  0xbe   :  { %v212_v62 = vmul.f32 %v391_v26, %v680_v28  ;;  %vm213_vm8 = vcmp.eq.f32.partialorder %v680_v28, inf  ;;  %v302_v11 = vsel %vm301_vm12, %v300_v58, %v295_v47  ;;  %v314_v10 = vrot.slane %v189_v46, %v313_v30 }
  0xbf   :  { %v193_v27 = vsel %vm192_vm10, %v678_v23, %v191_v51  ;;  %v205_v42 = vmul.f32 %v393_v56, %v682_v52  ;;  %v216_v57 = vand.u32 2147483648, %v680_v28  ;;  %v309_v2 = vsel %vm308_vm13, %v307_v9, %v302_v11 }
  0xc0   :  { %v196_v3 = vsel %vm194_vm11, %v195_v50, %v193_v27  ;;  %v214_v19 = vsel %vm213_vm8, %v680_v28, %v212_v62  ;;  %vm215_vm12 = vcmp.eq.f32.partialorder %v680_v28, 0.0  ;;  %v328_v12 = vrot.slane %v203_v37, %v327_v32 }
  0xc1   :  { %v207_v30 = vsel %vm206_vm7, %v682_v52, %v205_v42  ;;  %vm208_vm14 = vcmp.eq.f32.partialorder %v682_v52, 0.0  ;;  %v217_v21 = vsel %vm215_vm12, %v216_v57, %v214_v19  ;;  %v321_v7 = vrot.slane %v196_v3, %v320_v31 }
  0xc2   :  { %v210_v1 = vsel %vm208_vm14, %v209_v53, %v207_v30  ;;  %v316_v23 = vsel %vm315_vm2, %v314_v10, %v309_v2  ;;  %vm336_vm13 = vcmask 982912   ;;  %v342_v17 = vrot.slane %v217_v21, %v341_v5 }
  0xc3   :  { %v323_v28 = vsel %vm322_vm1, %v321_v7, %v316_v23  ;;  %v335_v14 = vrot.slane %v210_v1, %v334_v48  ;;  %vm343_vm15 = vcmask 1048512  }
  0xc4   :  { %v330_v32 = vsel %vm329_vm4, %v328_v12, %v323_v28 }
  0xc5   :  { %v337_v52 = vsel %vm336_vm13, %v335_v14, %v330_v32 }
  0xc6   :  { %v344_v13 = vsel %vm343_vm15, %v342_v17, %v337_v52 }
  0xc7   :  { %346 = vst [vmem:[#allocation2] sm:$0x1] %v344_v13 }
  0xc8   :  { %405 = shalt.err (!%p402_p4)
}
  0xc9   :  { %s406_s14 = scalar_lea.hbm %s793_s1, 16 }
  0xca   :  { %p407_p5 = scmp.ne.s32.totalorder %s793_s1, %s406_s14  ;;  %p410_p6 = scmp.lt.u32.totalorder %s406_s14, %s793_s1 }
  0xcc   :  { %p412_p7 = pnand %p410_p6, %p407_p5 }
  0xce   :  { %415 = shalt.err (!%p412_p7)
}
  0xcf   :  { %356 = dma.vmem_to_hbm [thread:$0]  %s354_s9, 16, %s793_s1, [#allocation3]  }
  0xd0   :  { %416 = dma.done.wait [#allocation3], 16  }
  0xd1   :  { %417 = vsyncadd [#allocation3], 4294967280 }
  0xd2   :  { %360 = vsyncpa [#allocation3], 1 }

</bundles_post_ra>
